<compile_context>
chip_gen: v5e
topology: v5e:2x2
jax: 0.10.0
libtpu: 0.0.40
codegen_flags: <defaults>
</compile_context>

<pallas_src>
import functools
import math

import jax
import jax.numpy as jnp
from jax.experimental import pallas as pl
from jax.experimental.pallas import tpu as pltpu

_LANE = 128
_SUBLANE = 8
# ~2 MiB per block: (2 bufs input + 2 bufs output) * 2 MiB ~= 8 MiB VMEM,
# safely under v5e's 16 MiB default scoped limit (and v6e/v7x's 32 MiB).
_TARGET_BLOCK_BYTES = 2 * 1024 * 1024


def _scale_mul_kernel(x_ref, mult_ref, o_ref):
    # x_ref: (row_tile, D_eff), mult_ref: (1, D_eff) f32 -> broadcast vmul.
    o_ref[...] = (x_ref[...] * mult_ref[...]).astype(o_ref.dtype)


def _make_apply(mult, k):
    """Build a jitted fn: array[..., :k] *= mult (mult is f32[k])."""
    mult = jnp.asarray(mult, dtype=jnp.float32)

    @functools.partial(jax.jit, donate_argnums=(0,))
    def apply(array):
        orig_shape = array.shape
        orig_dtype = array.dtype
        assert jnp.issubdtype(orig_dtype, jnp.floating), (
            "Scaler expects a floating-point array")
        D = orig_shape[-1]
        assert k <= D, "scale length must not exceed last dim"

        rows = 1
        for s in orig_shape[:-1]:
            rows *= s

        # Pad the multiplier with ones so columns >= k pass through unchanged.
        # Constant-folded inside the jitted graph; kept f32 so compute happens
        # in at-least-f32 precision regardless of input dtype.
        mult_d = jnp.concatenate(
            [mult, jnp.ones((D - k,), dtype=jnp.float32)])

        # Lane-dense packing: fold m rows so the last dim becomes a multiple
        # of 128 (unmasked stores). m = lcm(D, 128) / D = 128 / gcd(D, 128).
        m = 1
        if D % _LANE != 0:
            cand = _LANE // math.gcd(D, _LANE)
            if cand > 1 and rows % cand == 0:
                m = cand
        D_eff = m * D
        rows_eff = rows // m

        x2d = array.reshape(rows_eff, D_eff)
        mult_row = jnp.tile(mult_d, (m,)).reshape(1, D_eff)

        # Row tile: biggest multiple-of-8 tile within the VMEM block budget.
        itemsize = jnp.dtype(orig_dtype).itemsize
        budget_rows = max(
            _SUBLANE,
            (_TARGET_BLOCK_BYTES // (D_eff * itemsize)) // _SUBLANE * _SUBLANE,
        )
        if rows_eff <= budget_rows:
            row_tile = rows_eff  # single full-extent block (always legal)
        else:
            row_tile = budget_rows  # multiple of 8; ragged tail masked

        grid = (pl.cdiv(rows_eff, row_tile),)

        out = pl.pallas_call(
            _scale_mul_kernel,
            out_shape=jax.ShapeDtypeStruct((rows_eff, D_eff), orig_dtype),
            grid_spec=pltpu.PrefetchScalarGridSpec(
                num_scalar_prefetch=0,
                grid=grid,
                in_specs=[
                    pl.BlockSpec((row_tile, D_eff), lambda i: (i, 0)),
                    # Constant block index -> stays VMEM-resident across grid.
                    pl.BlockSpec((1, D_eff), lambda i: (0, 0)),
                ],
                out_specs=pl.BlockSpec((row_tile, D_eff), lambda i: (i, 0)),
            ),
            compiler_params=pltpu.CompilerParams(
                dimension_semantics=("parallel",),
            ),
            # In-place update of the (donated) input buffer.
            input_output_aliases={0: 0},
        )(x2d, mult_row)

        return out.reshape(orig_shape)

    return apply


class PallasScaler:
    """Pallas equivalent of the torch Scaler module (forward + inverse)."""

    def __init__(self, scale):
        scale = jnp.asarray(scale, dtype=jnp.float32)
        # __init__ logic: zeros -> 1.0 ; assert positivity (negatives rejected).
        scale = jnp.where(scale == 0, jnp.float32(1.0), scale)
        if not bool(jnp.all(scale > 0)):
            raise ValueError("Scale must be positive.")
        self._scale = scale
        self._k = int(scale.shape[0])
        # forward divides -> multiply by precomputed reciprocal.
        self.forward = _make_apply(jnp.float32(1.0) / scale, self._k)
        # inverse multiplies by the scale itself (same kernel).
        self.inverse = _make_apply(scale, self._k)

    def __call__(self, array):
        return self.forward(array)


if __name__ == "__main__":
    key = jax.random.PRNGKey(0)
    k_x, k_s, k_x2, k_x3 = jax.random.split(key, 4)

    # --- case 1: batch=2, seq=8, hidden=32 ; scale covers first 24 features.
    B, S, D = 2, 8, 32
    K = 24
    x = jax.random.normal(k_x, (B, S, D), dtype=jnp.float32)
    raw_scale = jax.random.uniform(
        k_s, (K,), dtype=jnp.float32, minval=0.0, maxval=2.0)
    # Deterministically force one zero entry to exercise the zero->1 rule.
    raw_scale = raw_scale.at[3].set(0.0)

    # Plain-JAX references (computed on non-donated copies).
    eff = jnp.where(raw_scale == 0, 1.0, raw_scale)
    y_fwd_ref = x.at[..., :K].set(x[..., :K] / eff)
    x_shape, x_dtype = x.shape, x.dtype

    scaler = PallasScaler(raw_scale)

    # forward (donates its arg -> pass a copy so x stays valid below).
    y_fwd = jax.block_until_ready(scaler.forward(jnp.array(x)))
    assert y_fwd.shape == x_shape and y_fwd.dtype == x_dtype
    assert jnp.allclose(y_fwd, y_fwd_ref, rtol=1e-5, atol=1e-6), (
        "forward mismatch vs reference")

    # inverse(forward(x)) should round-trip back to x.
    x_rt = jax.block_until_ready(scaler.inverse(jnp.array(y_fwd)))
    assert jnp.allclose(x_rt, x, rtol=1e-5, atol=1e-6), (
        "inverse round-trip mismatch")

    # --- case 2: D=40 (not a divisor of 128) exercises gcd-based packing.
    D2 = 40
    x2 = jax.random.normal(k_x2, (16, D2), dtype=jnp.float32)
    s2 = jnp.linspace(0.5, 2.0, D2, dtype=jnp.float32)
    y2_ref = x2 / s2
    y2 = jax.block_until_ready(PallasScaler(s2).forward(jnp.array(x2)))
    assert jnp.allclose(y2, y2_ref, rtol=1e-5, atol=1e-6), "case-2 mismatch"

    # --- case 3: odd shape (7, 33) -> no packing, full-extent single block.
    D3, K3 = 33, 10
    x3 = jax.random.normal(k_x3, (7, D3), dtype=jnp.float32)
    s3 = jnp.arange(1, K3 + 1, dtype=jnp.float32) * 0.25
    y3_ref = x3.at[..., :K3].set(x3[..., :K3] / s3)
    y3 = jax.block_until_ready(PallasScaler(s3).forward(jnp.array(x3)))
    assert jnp.allclose(y3, y3_ref, rtol=1e-5, atol=1e-6), "case-3 mismatch"

    print("KERNEL_OK")
</pallas_src>

<mosaic_0001>
module attributes {stable_mosaic.version = 11 : i64} {
  func.func @_scale_mul_kernel(%arg0: i32, %arg1: memref<4x128xf32, #tpu.memory_space<vmem>>, %arg2: memref<1x128xf32, #tpu.memory_space<vmem>>, %arg3: memref<4x128xf32, #tpu.memory_space<vmem>>) attributes {dimension_semantics = [#tpu.dimension_semantics<parallel>], iteration_bounds = array<i64: 1>, scalar_prefetch = 0 : i64, scratch_operands = 0 : i64, tpu.core_type = #tpu.core_type<tc>, window_params = [{transform_indices = @transform_0, window_bounds = array<i64: 4, 128>}, {pipeline_mode = #tpu.pipeline_mode<synchronous>, transform_indices = @transform_1, window_bounds = array<i64: 1, 128>}, {transform_indices = @transform_2, window_bounds = array<i64: 4, 128>}]} {
    %c0 = arith.constant 0 : index
    %c0_0 = arith.constant 0 : index
    %0 = vector.load %arg1[%c0, %c0_0] : memref<4x128xf32, #tpu.memory_space<vmem>>, vector<4x128xf32>
    %c0_1 = arith.constant 0 : index
    %c0_2 = arith.constant 0 : index
    %1 = vector.load %arg2[%c0_1, %c0_2] : memref<1x128xf32, #tpu.memory_space<vmem>>, vector<1x128xf32>
    %2 = vector.broadcast %1 : vector<1x128xf32> to vector<4x128xf32>
    %3 = arith.mulf %0, %2 : vector<4x128xf32>
    %c0_3 = arith.constant 0 : index
    %c0_4 = arith.constant 0 : index
    %4 = vector.load %arg3[%c0_3, %c0_4] : memref<4x128xf32, #tpu.memory_space<vmem>>, vector<4x128xf32>
    tpu.vector_store %arg3[%c0_3, %c0_4], %3 {strides = array<i32>} : memref<4x128xf32, #tpu.memory_space<vmem>>, vector<4x128xf32>,
    return
  }
  func.func @transform_0(%arg0: i32) -> (i32, i32) {
    %c0_i32 = arith.constant 0 : i32
    %c0_i32_0 = arith.constant 0 : i32
    return %arg0, %c0_i32 : i32, i32
  }
  func.func @transform_1(%arg0: i32) -> (i32, i32) {
    %c0_i32 = arith.constant 0 : i32
    %c0_i32_0 = arith.constant 0 : i32
    %c0_i32_1 = arith.constant 0 : i32
    return %c0_i32, %c0_i32_0 : i32, i32
  }
  func.func @transform_2(%arg0: i32) -> (i32, i32) {
    %c0_i32 = arith.constant 0 : i32
    %c0_i32_0 = arith.constant 0 : i32
    return %arg0, %c0_i32 : i32, i32
  }
}

</mosaic_0001>

<bundles_post_ra>
// kernel: tile.7
= control target key start
LH: loop header
LB: loop body
LE: loop exit
PB: predicated region body
PF: predicated region fallthrough
CT: control target
= control target key end

     0   :  { %s37_s8 = smov 32   ;;  %s38_s9 = smov 64   ;;  %vm7_vm0 = vcmask 261120   ;;  %vm13_vm1 = vcmask 1048320   ;;  %vm19_vm2 = vcmask 785920   ;;  %vm25_vm3 = vcmask 523520   ;;  %s55_s0 = inlined_call_operand.vmem [shape: f32[4,32], index: 0, kind: input, shape index: {}]   ;;  %s56_s1 = inlined_call_operand.vmem [shape: f32[1,128], index: 1, kind: output, shape index: {}]  }
   0x1   :  { %v4_v0 = vld [vmem:[%s55_s0] sm:$0xf]  ;;  %s36_s0 = smov 96  }
   0x2   :  { %5 = vst [vmem:[#allocation1] sm:$0xf] %v4_v0 }
   0x9   :  { %v10_v1 = vld [vmem:[#allocation1 + $0x3] sm:$0x1]   ;;  %v22_v2 = vld [vmem:[#allocation1 + $0x1] sm:$0x1]   ;;  %v16_v3 = vld [vmem:[#allocation1 + $0x2] sm:$0x1]  }
   0xa   :  { %11 = vrot.lane.b32.xlu0 %v10_v1, %s36_s0  ;;  %23 = vrot.lane.b32.xlu1 %v22_v2, %s37_s8  ;;  %v6_v4 = vld [vmem:[#allocation1] sm:$0x1]  }
   0xb   :  { %8 = vst.msk [vmem:[#allocation0] sm:$0x1] %vm7_vm0, %v6_v4  }
  0x12   :  { %17 = vrot.lane.b32.xlu0 %v16_v3, %s38_s9 }
  0x7c   :  { %v12_v5 = vpop.permute.xlu0 %11   ;;  %v24_v6 = vpop.permute.xlu1 %23  }
  0x7d   :  { %14 = vst.msk [vmem:[#allocation0] sm:$0x1] %vm13_vm1, %v12_v5  }
  0x84   :  { %v18_v7 = vpop.permute.xlu0 %17  }
  0x85   :  { %20 = vst.msk [vmem:[#allocation0] sm:$0x1] %vm19_vm2, %v18_v7  }
  0x86   :  { %26 = vst.msk [vmem:[#allocation0] sm:$0x1] %vm25_vm3, %v24_v6  }
  0x8d   :  { %v29_v8 = vld [vmem:[#allocation0] sm:$0x1] }
  0x8e   :  { %32 = vst [vmem:[%s56_s1] sm:$0x1] %v29_v8 }

// kernel: tile.6
= control target key start
LH: loop header
LB: loop body
LE: loop exit
PB: predicated region body
PF: predicated region fallthrough
CT: control target
= control target key end

     0   :  { %s22_s0 = inlined_call_operand.vmem [shape: f32[32], index: 0, kind: input, shape index: {}]   ;;  %s23_s1 = inlined_call_operand.vmem [shape: f32[4,32], index: 1, kind: output, shape index: {}]  }
   0x1   :  { %v4_v0 = vld [vmem:[%s22_s0] ss:$0 sm:$0xff] }
   0x2   :  { %5 = vst [vmem:[%s23_s1] sm:$0xf] %v4_v0 }

// kernel: apply.1
= control target key start
LH: loop header
LB: loop body
LE: loop exit
PB: predicated region body
PF: predicated region fallthrough
CT: control target
= control target key end

     0   :  { %s47_s0 = inlined_call_operand.vmem [shape: f32[4,128], index: 0, kind: input, shape index: {}, may-alias: {0,2}]   ;;  %s48_s1 = inlined_call_operand.vmem [shape: f32[1,128], index: 1, kind: input, shape index: {}]   ;;  %s49_s2 = inlined_call_operand.vmem [shape: f32[4,128], index: 2, kind: output, shape index: {}, may-alias: {0,2}]  }
   0x1   :  { %v11_v0 = vld [vmem:[%s47_s0] sm:$0xf] }
   0x2   :  { %v22_v1 = vld [vmem:[%s48_s1] ss:$0 sm:$0xff] }
   0x3   :  { %v16_v2 = vmul.f32 %v22_v1, %v11_v0 }
   0x5   :  { %17 = vst [vmem:[%s49_s2] sm:$0xf] %v16_v2 }

</bundles_post_ra>
